<compile_context>
chip_gen: v7x
topology: tpu7x:2x2x1
jax: 0.10.0
libtpu: 0.0.40
codegen_flags: <defaults>
</compile_context>

<pallas_src>
import jax
import jax.numpy as jnp
from jax import lax
from jax.experimental import pallas as pl
from jax.experimental.pallas import tpu as pltpu

# Contract x dim 1 with weight dim 1:  [B, in] x [tn, in] -> [B, tn]
_DN = (((1,), (1,)), ((), ()))


def _noisy_linear_kernel(x_ref, mu_w_ref, sig_w_ref, mu_b_ref, sig_b_ref,
                         eps_in_ref, eps_out_ref, o_ref):
    x = x_ref[...]                      # [B, in]   (resident across grid steps)
    eps_in = eps_in_ref[...]            # [1, in]
    eps_out = eps_out_ref[...]          # [1, tn]

    # mu path: x @ mu_W.T  (MXU)
    y_mu = lax.dot_general(x, mu_w_ref[...], _DN,
                           preferred_element_type=jnp.float32)
    # sigma path: (x * eps_in) @ sigma_W.T  (one vreg-sized VPU mul + MXU)
    y_sig = lax.dot_general(x * eps_in, sig_w_ref[...], _DN,
                            preferred_element_type=jnp.float32)

    b_eff = sig_b_ref[...] * eps_out + mu_b_ref[...]    # [1, tn]
    o_ref[...] = (y_mu + y_sig * eps_out + b_eff).astype(o_ref.dtype)


def _mu_linear_kernel(x_ref, mu_w_ref, mu_b_ref, o_ref):
    y = lax.dot_general(x_ref[...], mu_w_ref[...], _DN,
                        preferred_element_type=jnp.float32)
    o_ref[...] = (y + mu_b_ref[...]).astype(o_ref.dtype)


def _pick_tn(out_f, in_f, n_weight_streams):
    """Largest lane-dense (multiple-of-128) out-feature tile dividing out_f
    whose double-buffered weight tiles fit a conservative VMEM budget."""
    budget = 8 * 1024 * 1024  # bytes reserved for pipelined weight tiles
    max_tn = max(128, budget // (2 * n_weight_streams * in_f * 4))
    for cand in (1024, 512, 256, 128):
        if cand <= max_tn and out_f % cand == 0:
            return cand
    return out_f  # small / irregular out_f: single full-width block


def noisy_linear(x, mu_weight, sigma_weight, mu_bias, sigma_bias,
                 eps_input, eps_output, *, training=True, tn=None):
    """Forward pass of FactorisedNoisyLayer.

    x:            [..., in_features]  (leading dims flattened, like F.linear)
    mu_weight:    [out_features, in_features]   (PyTorch layout, untouched)
    sigma_weight: [out_features, in_features]
    mu_bias:      [out_features]
    sigma_bias:   [out_features]
    eps_input:    [in_features]
    eps_output:   [out_features]
    Returns [..., out_features] (f32).
    """
    orig_shape = x.shape
    in_f = orig_shape[-1]
    x2 = x.reshape(-1, in_f)
    B = x2.shape[0]
    out_f = mu_weight.shape[0]

    n_streams = 2 if training else 1
    if tn is None:
        tn = _pick_tn(out_f, in_f, n_streams)
    grid = (out_f // tn,)

    out_shape = jax.ShapeDtypeStruct((B, out_f), jnp.float32)
    mu_b2 = mu_bias.reshape(1, out_f)

    # x (and eps_in) stay fully resident across grid steps.
    x_spec = pl.BlockSpec((B, in_f), lambda j: (0, 0))
    w_spec = pl.BlockSpec((tn, in_f), lambda j: (j, 0))     # weight row-tile
    row_tile = pl.BlockSpec((1, tn), lambda j: (0, j))      # per-out-feature vecs
    out_spec = pl.BlockSpec((B, tn), lambda j: (0, j))      # lane-dense stores

    cparams = pltpu.CompilerParams(dimension_semantics=("parallel",))

    if not training:
        # Eval path: mu-only linear; sigma_weight / noise never read from HBM.
        flops = 2 * B * in_f * out_f
        bytes_acc = 4 * (B * in_f + out_f * in_f + out_f + B * out_f)
        y = pl.pallas_call(
            _mu_linear_kernel,
            out_shape=out_shape,
            grid=grid,
            in_specs=[x_spec, w_spec, row_tile],
            out_specs=out_spec,
            compiler_params=cparams,
            cost_estimate=pl.CostEstimate(flops=flops, transcendentals=0,
                                          bytes_accessed=bytes_acc),
        )(x2, mu_weight, mu_b2)
        return y.reshape(orig_shape[:-1] + (out_f,))

    sig_b2 = sigma_bias.reshape(1, out_f)
    eps_in2 = eps_input.reshape(1, in_f)
    eps_out2 = eps_output.reshape(1, out_f)
    eps_in_spec = pl.BlockSpec((1, in_f), lambda j: (0, 0))

    flops = 2 * 2 * B * in_f * out_f
    bytes_acc = 4 * (B * in_f + 2 * out_f * in_f + 3 * out_f + in_f
                     + B * out_f)
    y = pl.pallas_call(
        _noisy_linear_kernel,
        out_shape=out_shape,
        grid=grid,
        in_specs=[x_spec, w_spec, w_spec, row_tile, row_tile,
                  eps_in_spec, row_tile],
        out_specs=out_spec,
        compiler_params=cparams,
        cost_estimate=pl.CostEstimate(flops=flops, transcendentals=0,
                                      bytes_accessed=bytes_acc),
    )(x2, mu_weight, sigma_weight, mu_b2, sig_b2, eps_in2, eps_out2)
    return y.reshape(orig_shape[:-1] + (out_f,))


def init_params(key, input_features, output_features, sigma=0.5):
    """Deterministic parameter init matching FactorisedNoisyLayer.__init__."""
    bound = input_features ** (-0.5)
    k_mu_b, k_mu_w = jax.random.split(key)
    mu_bias = jax.random.uniform(k_mu_b, (output_features,),
                                 minval=-bound, maxval=bound, dtype=jnp.float32)
    sigma_bias = jnp.full((output_features,), sigma * bound, dtype=jnp.float32)
    mu_weight = jax.random.uniform(k_mu_w, (output_features, input_features),
                                   minval=-bound, maxval=bound,
                                   dtype=jnp.float32)
    sigma_weight = jnp.full((output_features, input_features),
                            sigma * bound, dtype=jnp.float32)
    return mu_weight, sigma_weight, mu_bias, sigma_bias


def sample_noise(key, input_features, output_features, bound):
    """Factorised noise: f(u) = sign(u) * sqrt(|u|), u ~ U(-bound, bound)."""
    k_in, k_out = jax.random.split(key)

    def f(k, n):
        u = jax.random.uniform(k, (n,), minval=-bound, maxval=bound,
                               dtype=jnp.float32)
        return jnp.sign(u) * jnp.sqrt(jnp.abs(u))

    return f(k_in, input_features), f(k_out, output_features)


def reference_forward(x, mu_w, sig_w, mu_b, sig_b, eps_in, eps_out,
                      training=True):
    if not training:
        return x @ mu_w.T + mu_b
    w = sig_w * jnp.outer(eps_out, eps_in) + mu_w
    b = sig_b * eps_out + mu_b
    return x @ w.T + b


if __name__ == "__main__":
    # Small but grid-exercising shapes: out_f tiles as 2 lane-dense 128 blocks.
    B, IN_F, OUT_F = 8, 128, 256
    SIGMA = 0.5
    bound = IN_F ** (-0.5)

    root = jax.random.PRNGKey(0)
    k_param, k_noise, k_x = jax.random.split(root, 3)

    mu_w, sig_w, mu_b, sig_b = init_params(k_param, IN_F, OUT_F, SIGMA)
    eps_in, eps_out = sample_noise(k_noise, IN_F, OUT_F, bound)
    x = jax.random.normal(k_x, (B, IN_F), dtype=jnp.float32)

    # Training path: two-matmul noisy formulation fused in one Pallas kernel.
    y = noisy_linear(x, mu_w, sig_w, mu_b, sig_b, eps_in, eps_out,
                     training=True)
    y = jax.block_until_ready(y)

    # Eval path: dedicated mu-only kernel (sigma_weight never read).
    y_eval = noisy_linear(x, mu_w, sig_w, mu_b, sig_b, eps_in, eps_out,
                          training=False)
    y_eval = jax.block_until_ready(y_eval)

    # Correctness checks against a pure-JAX reference.
    y_ref = reference_forward(x, mu_w, sig_w, mu_b, sig_b, eps_in, eps_out,
                              training=True)
    y_eval_ref = reference_forward(x, mu_w, sig_w, mu_b, sig_b, eps_in,
                                   eps_out, training=False)
    assert y.shape == (B, OUT_F) and y.dtype == jnp.float32
    assert jnp.allclose(y, y_ref, atol=1e-5, rtol=1e-5)
    assert jnp.allclose(y_eval, y_eval_ref, atol=1e-5, rtol=1e-5)

    # TODO(synk): noise (re)sampling stays in the JAX wrapper (sample_noise);
    # it is a stateful buffer update in PyTorch, not part of the matmul kernel.
    print("KERNEL_OK")
</pallas_src>

<mosaic_0001>
module attributes {stable_mosaic.version = 11 : i64} {
  func.func @_noisy_linear_kernel(%arg0: i32, %arg1: memref<8x128xf32, #tpu.memory_space<vmem>>, %arg2: memref<256x128xf32, #tpu.memory_space<vmem>>, %arg3: memref<256x128xf32, #tpu.memory_space<vmem>>, %arg4: memref<1x256xf32, #tpu.memory_space<vmem>>, %arg5: memref<1x256xf32, #tpu.memory_space<vmem>>, %arg6: memref<1x128xf32, #tpu.memory_space<vmem>>, %arg7: memref<1x256xf32, #tpu.memory_space<vmem>>, %arg8: memref<8x256xf32, #tpu.memory_space<vmem>>) attributes {dimension_semantics = [#tpu.dimension_semantics<parallel>], iteration_bounds = array<i64: 1>, scalar_prefetch = 0 : i64, scratch_operands = 0 : i64, tpu.core_type = #tpu.core_type<tc>, window_params = [{pipeline_mode = #tpu.pipeline_mode<synchronous>, transform_indices = @transform_0, window_bounds = array<i64: 8, 128>}, {transform_indices = @transform_1, window_bounds = array<i64: 256, 128>}, {transform_indices = @transform_2, window_bounds = array<i64: 256, 128>}, {transform_indices = @transform_3, window_bounds = array<i64: 1, 256>}, {transform_indices = @transform_4, window_bounds = array<i64: 1, 256>}, {pipeline_mode = #tpu.pipeline_mode<synchronous>, transform_indices = @transform_5, window_bounds = array<i64: 1, 128>}, {transform_indices = @transform_6, window_bounds = array<i64: 1, 256>}, {transform_indices = @transform_7, window_bounds = array<i64: 8, 256>}]} {
    %c0 = arith.constant 0 : index
    %c0_0 = arith.constant 0 : index
    %0 = vector.load %arg1[%c0, %c0_0] : memref<8x128xf32, #tpu.memory_space<vmem>>, vector<8x128xf32>
    %c0_1 = arith.constant 0 : index
    %c0_2 = arith.constant 0 : index
    %1 = vector.load %arg6[%c0_1, %c0_2] : memref<1x128xf32, #tpu.memory_space<vmem>>, vector<1x128xf32>
    %c0_3 = arith.constant 0 : index
    %c0_4 = arith.constant 0 : index
    %2 = vector.load %arg7[%c0_3, %c0_4] : memref<1x256xf32, #tpu.memory_space<vmem>>, vector<1x256xf32>
    %c0_5 = arith.constant 0 : index
    %c0_6 = arith.constant 0 : index
    %3 = vector.load %arg2[%c0_5, %c0_6] : memref<256x128xf32, #tpu.memory_space<vmem>>, vector<256x128xf32>
    %cst = arith.constant dense<0.000000e+00> : vector<8x256xf32>
    %4 = tpu.matmul %0, %3, %cst {dimension_numbers = #tpu.dot_dimension_numbers<[1], [1], [0], [0], [0, 0, 1, 0], [], []>} : vector<8x128xf32>, vector<256x128xf32>, vector<8x256xf32> -> vector<8x256xf32>
    %5 = vector.broadcast %1 : vector<1x128xf32> to vector<8x128xf32>
    %6 = arith.mulf %0, %5 : vector<8x128xf32>
    %c0_7 = arith.constant 0 : index
    %c0_8 = arith.constant 0 : index
    %7 = vector.load %arg3[%c0_7, %c0_8] : memref<256x128xf32, #tpu.memory_space<vmem>>, vector<256x128xf32>
    %cst_9 = arith.constant dense<0.000000e+00> : vector<8x256xf32>
    %8 = tpu.matmul %6, %7, %cst_9 {dimension_numbers = #tpu.dot_dimension_numbers<[1], [1], [0], [0], [0, 0, 1, 0], [], []>} : vector<8x128xf32>, vector<256x128xf32>, vector<8x256xf32> -> vector<8x256xf32>
    %c0_10 = arith.constant 0 : index
    %c0_11 = arith.constant 0 : index
    %9 = vector.load %arg5[%c0_10, %c0_11] : memref<1x256xf32, #tpu.memory_space<vmem>>, vector<1x256xf32>
    %10 = arith.mulf %9, %2 : vector<1x256xf32>
    %c0_12 = arith.constant 0 : index
    %c0_13 = arith.constant 0 : index
    %11 = vector.load %arg4[%c0_12, %c0_13] : memref<1x256xf32, #tpu.memory_space<vmem>>, vector<1x256xf32>
    %12 = arith.addf %10, %11 : vector<1x256xf32>
    %13 = vector.broadcast %2 : vector<1x256xf32> to vector<8x256xf32>
    %14 = arith.mulf %8, %13 : vector<8x256xf32>
    %15 = arith.addf %4, %14 : vector<8x256xf32>
    %16 = vector.broadcast %12 : vector<1x256xf32> to vector<8x256xf32>
    %17 = arith.addf %15, %16 : vector<8x256xf32>
    %c0_14 = arith.constant 0 : index
    %c0_15 = arith.constant 0 : index
    %18 = vector.load %arg8[%c0_14, %c0_15] : memref<8x256xf32, #tpu.memory_space<vmem>>, vector<8x256xf32>
    tpu.vector_store %arg8[%c0_14, %c0_15], %17 {strides = array<i32>} : memref<8x256xf32, #tpu.memory_space<vmem>>, vector<8x256xf32>,
    return
  }
  func.func @transform_0(%arg0: i32) -> (i32, i32) {
    %c0_i32 = arith.constant 0 : i32
    %c0_i32_0 = arith.constant 0 : i32
    %c0_i32_1 = arith.constant 0 : i32
    return %c0_i32, %c0_i32_0 : i32, i32
  }
  func.func @transform_1(%arg0: i32) -> (i32, i32) {
    %c0_i32 = arith.constant 0 : i32
    %c0_i32_0 = arith.constant 0 : i32
    return %arg0, %c0_i32 : i32, i32
  }
  func.func @transform_2(%arg0: i32) -> (i32, i32) {
    %c0_i32 = arith.constant 0 : i32
    %c0_i32_0 = arith.constant 0 : i32
    return %arg0, %c0_i32 : i32, i32
  }
  func.func @transform_3(%arg0: i32) -> (i32, i32) {
    %c0_i32 = arith.constant 0 : i32
    %c0_i32_0 = arith.constant 0 : i32
    return %c0_i32, %arg0 : i32, i32
  }
  func.func @transform_4(%arg0: i32) -> (i32, i32) {
    %c0_i32 = arith.constant 0 : i32
    %c0_i32_0 = arith.constant 0 : i32
    return %c0_i32, %arg0 : i32, i32
  }
  func.func @transform_5(%arg0: i32) -> (i32, i32) {
    %c0_i32 = arith.constant 0 : i32
    %c0_i32_0 = arith.constant 0 : i32
    %c0_i32_1 = arith.constant 0 : i32
    return %c0_i32, %c0_i32_0 : i32, i32
  }
  func.func @transform_6(%arg0: i32) -> (i32, i32) {
    %c0_i32 = arith.constant 0 : i32
    %c0_i32_0 = arith.constant 0 : i32
    return %c0_i32, %arg0 : i32, i32
  }
  func.func @transform_7(%arg0: i32) -> (i32, i32) {
    %c0_i32 = arith.constant 0 : i32
    %c0_i32_0 = arith.constant 0 : i32
    return %c0_i32, %arg0 : i32, i32
  }
}

</mosaic_0001>

<bundles_post_ra>
// kernel: tpu_custom_call.1
= control target key start
LH: loop header
LB: loop body
LE: loop exit
PB: predicated region body
PF: predicated region fallthrough
CT: control target
= control target key end

     0   :  { %12 = vsyncpa [#allocation3], 0  ;;  %s684_s0 = inlined_call_operand.hbm [shape: f32[8,128], index: 0, kind: input, shape index: {}]   ;;  %s685_s1 = inlined_call_operand.hbm [shape: f32[256,128], index: 1, kind: input, shape index: {}]   ;;  %s686_s2 = inlined_call_operand.hbm [shape: f32[256,128], index: 2, kind: input, shape index: {}]   ;;  %s687_s3 = inlined_call_operand.vmem [shape: f32[1,256], index: 3, kind: input, shape index: {}]   ;;  %s688_s4 = inlined_call_operand.vmem [shape: f32[1,256], index: 4, kind: input, shape index: {}]   ;;  %s689_s5 = inlined_call_operand.vmem [shape: f32[1,128], index: 5, kind: input, shape index: {}]   ;;  %s690_s6 = inlined_call_operand.vmem [shape: f32[1,256], index: 6, kind: input, shape index: {}]   ;;  %s691_s7 = inlined_call_operand.hbm [shape: f32[8,256], index: 7, kind: output, shape index: {}]  }
   0x1   :  { %13 = vsyncpa [#allocation6], 0 }
   0x2   :  { %14 = vsyncpa [#allocation4], 0  ;;  %s563_s24 = smov [#allocation5]   ;;  %s469_s28 = scalar_lea.hbm %s685_s1, 4096 }
   0x3   :  { %s30_s25 = sshll.u32 %s563_s24, 4  ;;  %p470_p0 = scmp.ne.s32.totalorder %s685_s1, %s469_s28  ;;  %s31_s25 = int_to_ptr.vmem [resolvable:$true] %s30_s25 }
   0x4   :  { %p473_p1 = scmp.lt.u32.totalorder %s469_s28, %s685_s1 }
   0x6   :  { %p475_p2 = pnand %p473_p1, %p470_p0 }
   0x8   :  { %478 = shalt.err (!%p475_p2)
}
   0x9   :  { %s479_s10 = scalar_lea.vmem %s31_s25, 4096  ;;  %p484_p4 = scmp.lt.s32.totalorder %s31_s25, %s31_s25 }
   0xa   :  { %p480_p3 = scmp.ne.s32.totalorder %s31_s25, %s479_s10  ;;  %p485_p5 = scmp.lt.s32.totalorder %s479_s10, %s479_s10 }
   0xc   :  { %p486_p6 = por %p485_p5, %p484_p4 }
   0xe   :  { %p487_p7 = pnand %p486_p6, %p480_p3 }
  0x10   :  { %490 = shalt.err (!%p487_p7)
}
  0x11   :  { %s564_s11 = smov 128   ;;  %s565_s12 = smov 8  }
  0x12   :  { %36 = dma.hbm_to_vmem [thread:$0]  %s685_s1, 4096, %s31_s25, [#allocation6], %s564_s11, %s564_s11, %s565_s12  }
  0x13   :  { %s566_s15 = smov [#allocation2]   ;;  %s567_s17 = smov [#allocation7]  }
  0x14   :  { %s21_s16 = sshll.u32 %s566_s15, 4  ;;  %s42_s18 = sshll.u32 %s567_s17, 4  ;;  %s22_s16 = int_to_ptr.vmem [resolvable:$true] %s21_s16  ;;  %s43_s18 = int_to_ptr.vmem [resolvable:$true] %s42_s18 }
  0x15   :  { %s491_s21 = scalar_lea.hbm %s684_s0, 128 }
  0x16   :  { %p492_p8 = scmp.ne.s32.totalorder %s684_s0, %s491_s21  ;;  %p495_p9 = scmp.lt.u32.totalorder %s491_s21, %s684_s0 }
  0x18   :  { %p497_p10 = pnand %p495_p9, %p492_p8 }
  0x1a   :  { %500 = shalt.err (!%p497_p10)
}
  0x1b   :  { %s501_s1 = scalar_lea.vmem %s22_s16, 128  ;;  %p506_p12 = scmp.lt.s32.totalorder %s22_s16, %s22_s16 }
  0x1c   :  { %p502_p11 = scmp.ne.s32.totalorder %s22_s16, %s501_s1  ;;  %p507_p13 = scmp.lt.s32.totalorder %s501_s1, %s501_s1 }
  0x1e   :  { %p508_p0 = por %p507_p13, %p506_p12 }
  0x20   :  { %p509_p1 = pnand %p508_p0, %p502_p11 }
  0x22   :  { %512 = shalt.err (!%p509_p1)
}
  0x23   :  { %24 = dma.hbm_to_vmem [thread:$0]  %s684_s0, 128, %s22_s16, [#allocation3]  }
  0x24   :  { %s513_s30 = scalar_lea.hbm %s686_s2, 4096 }
  0x25   :  { %p514_p2 = scmp.ne.s32.totalorder %s686_s2, %s513_s30  ;;  %p517_p3 = scmp.lt.u32.totalorder %s513_s30, %s686_s2 }
  0x27   :  { %p519_p4 = pnand %p517_p3, %p514_p2 }
  0x29   :  { %522 = shalt.err (!%p519_p4)
}
  0x2a   :  { %s523_s14 = scalar_lea.vmem %s43_s18, 4096  ;;  %p528_p6 = scmp.lt.s32.totalorder %s43_s18, %s43_s18 }
  0x2b   :  { %p524_p5 = scmp.ne.s32.totalorder %s43_s18, %s523_s14  ;;  %p529_p7 = scmp.lt.s32.totalorder %s523_s14, %s523_s14 }
  0x2d   :  { %p530_p8 = por %p529_p7, %p528_p6 }
  0x2f   :  { %p531_p9 = pnand %p530_p8, %p524_p5 }
  0x31   :  { %534 = shalt.err (!%p531_p9)
}
  0x32   :  { %48 = dma.hbm_to_vmem [thread:$0]  %s686_s2, 4096, %s43_s18, [#allocation6], %s564_s11, %s564_s11, %s565_s12  }
  0x33   :  { %557 = dma.done.wait [#allocation3], 128  }
  0x34   :  { %558 = vsyncadd [#allocation3], 4294967168 }
  0x35   :  { %559 = dma.done.wait [#allocation6], 8192  }
  0x36   :  { %560 = vsyncadd [#allocation6], 4294959104  ;;  %v124_v0 = vld [vmem:[#allocation7 + $0x80] sm:$0xff]  ;;  %v125_v1 = vld [vmem:[#allocation7 + $0x88] sm:$0xff] }
  0x37   :  { %v108_v2 = vld [vmem:[#allocation7] sm:$0xff]  ;;  %v399_v3 = vpack.c.bf16 %v125_v1, %v124_v0  ;;  %v109_v4 = vld [vmem:[#allocation7 + $0x8] sm:$0xff]  ;;  %v126_v11 = vld [vmem:[#allocation7 + $0x90] sm:$0xff] }
  0x38   :  { %v85_v5 = vld [vmem:[#allocation5 + $0x80] sm:$0xff]  ;;  %v86_v6 = vld [vmem:[#allocation5 + $0x88] sm:$0xff]  ;;  %v401_v7 = vpack.c.bf16 %v109_v4, %v108_v2  ;;  %v127_v13 = vld [vmem:[#allocation7 + $0x98] sm:$0xff] }
  0x39   :  { %v431_v8 = vpack.c.bf16 %v86_v6, %v85_v5  ;;  %v69_v9 = vld [vmem:[#allocation5] sm:$0xff]  ;;  %v70_v10 = vld [vmem:[#allocation5 + $0x8] sm:$0xff]  ;;  %400 = vmatprep.subr.bf16.mxu0 %v399_v3  ;;  %v403_v14 = vpack.c.bf16 %v127_v13, %v126_v11  ;;  %v87_v15 = vld [vmem:[#allocation5 + $0x90] sm:$0xff] }
  0x3a   :  { %v433_v12 = vpack.c.bf16 %v70_v10, %v69_v9  ;;  %402 = vmatpush3.bf16.xpose.msra.mxu0 %v401_v7  ;;  %v88_v16 = vld [vmem:[#allocation5 + $0x98] sm:$0xff]  ;;  %v110_v17 = vld [vmem:[#allocation7 + $0x10] sm:$0xff]  ;;  %v128_v22 = vld [vmem:[#allocation7 + $0xa0] sm:$0xff] }
  0x3b   :  { %432 = vmatprep.subr.bf16.mxu1 %v431_v8  ;;  %v111_v18 = vld [vmem:[#allocation7 + $0x18] sm:$0xff]  ;;  %v435_v19 = vpack.c.bf16 %v88_v16, %v87_v15  ;;  %v71_v20 = vld [vmem:[#allocation5 + $0x10] sm:$0xff]  ;;  %404 = vmatprep.subr.bf16.mxu0 %v403_v14  ;;  %v129_v23 = vld [vmem:[#allocation7 + $0xa8] sm:$0xff] }
  0x3c   :  { %434 = vmatpush3.bf16.xpose.msra.mxu1 %v433_v12  ;;  %v72_v21 = vld [vmem:[#allocation5 + $0x18] sm:$0xff]  ;;  %v89_v24 = vld [vmem:[#allocation5 + $0xa0] sm:$0xff]  ;;  %v90_v25 = vld [vmem:[#allocation5 + $0xa8] sm:$0xff]  ;;  %v405_v26 = vpack.c.bf16 %v111_v18, %v110_v17  ;;  %v407_v28 = vpack.c.bf16 %v129_v23, %v128_v22 }
  0x3d   :  { %436 = vmatprep.subr.bf16.mxu1 %v435_v19  ;;  %v437_v27 = vpack.c.bf16 %v72_v21, %v71_v20  ;;  %v439_v29 = vpack.c.bf16 %v90_v25, %v89_v24  ;;  %v112_v30 = vld [vmem:[#allocation7 + $0x20] sm:$0xff]  ;;  %v113_v31 = vld [vmem:[#allocation7 + $0x28] sm:$0xff]  ;;  %v130_v34 = vld [vmem:[#allocation7 + $0xb0] sm:$0xff] }
  0x3e   :  { %v73_v32 = vld [vmem:[#allocation5 + $0x20] sm:$0xff]  ;;  %v74_v33 = vld [vmem:[#allocation5 + $0x28] sm:$0xff]  ;;  %v131_v35 = vld [vmem:[#allocation7 + $0xb8] sm:$0xff]  ;;  %v409_v38 = vpack.c.bf16 %v113_v31, %v112_v30 }
  0x3f   :  { %v91_v36 = vld [vmem:[#allocation5 + $0xb0] sm:$0xff]  ;;  %v92_v37 = vld [vmem:[#allocation5 + $0xb8] sm:$0xff]  ;;  %v441_v39 = vpack.c.bf16 %v74_v33, %v73_v32  ;;  %v411_v40 = vpack.c.bf16 %v131_v35, %v130_v34  ;;  %v132_v48 = vld [vmem:[#allocation7 + $0xc0] sm:$0xff]  ;;  %v216_v35 = vlaneseq }
  0x40   :  { %v443_v41 = vpack.c.bf16 %v92_v37, %v91_v36  ;;  %v114_v42 = vld [vmem:[#allocation7 + $0x30] sm:$0xff]  ;;  %v115_v43 = vld [vmem:[#allocation7 + $0x38] sm:$0xff]  ;;  %v133_v49 = vld [vmem:[#allocation7 + $0xc8] sm:$0xff] }
  0x41   :  { %v75_v44 = vld [vmem:[#allocation5 + $0x30] sm:$0xff]  ;;  %v651_v45 = vld [vmem:[#allocation2] sm:$0xff]  ;;  %v93_v51 = vld [vmem:[#allocation5 + $0xc0] sm:$0xff]  ;;  %v413_v53 = vpack.c.bf16 %v115_v43, %v114_v42  ;;  %v415_v55 = vpack.c.bf16 %v133_v49, %v132_v48  ;;  %v217_v36 = vshrl.u32 %v216_v35, 7 }
  0x42   :  { %406 = vmatpush3.bf16.xpose.msra.mxu0 %v405_v26  ;;  %v330_v46 = vld [vmem:[%s689_s5] ss:$0 sm:$0xff]  ;;  %397 = vmatprep.mubr.f32.mxu1 %v651_v45  ;;  %v94_v52 = vld [vmem:[#allocation5 + $0xc8] sm:$0xff]  ;;  %v116_v57 = vld [vmem:[#allocation7 + $0x40] sm:$0xff] }
  0x43   :  { %408 = vmatprep.subr.bf16.mxu0 %v407_v28  ;;  %v76_v47 = vld [vmem:[#allocation5 + $0x38] sm:$0xff]  ;;  %v657_v50 = vmul.f32 %v330_v46, %v651_v45  ;;  %v447_v56 = vpack.c.bf16 %v94_v52, %v93_v51  ;;  %v117_v58 = vld [vmem:[#allocation7 + $0x48] sm:$0xff]  ;;  %v77_v59 = vld [vmem:[#allocation5 + $0x40] sm:$0xff] }
  0x44   :  { %438 = vmatpush3.bf16.xpose.msra.mxu1 %v437_v27  ;;  %v445_v54 = vpack.c.bf16 %v76_v47, %v75_v44  ;;  %v78_v60 = vld [vmem:[#allocation5 + $0x48] sm:$0xff]  ;;  %v134_v61 = vld [vmem:[#allocation7 + $0xd0] sm:$0xff]  ;;  %v135_v62 = vld [vmem:[#allocation7 + $0xd8] sm:$0xff]  ;;  %v417_v1 = vpack.c.bf16 %v117_v58, %v116_v57 }
  0x45   :  { %440 = vmatprep.subr.bf16.mxu1 %v439_v29  ;;  %363 = vmatprep.mubr.f32.mxu0 %v657_v50  ;;  %v95_v63 = vld [vmem:[#allocation5 + $0xd0] sm:$0xff]  ;;  %v96_v0 = vld [vmem:[#allocation5 + $0xd8] sm:$0xff]  ;;  %v449_v2 = vpack.c.bf16 %v78_v60, %v77_v59  ;;  %v419_v3 = vpack.c.bf16 %v135_v62, %v134_v61  ;;  %v136_v9 = vld [vmem:[#allocation7 + $0xe0] sm:$0xff] }
  0x46   :  { %v451_v4 = vpack.c.bf16 %v96_v0, %v95_v63  ;;  %v118_v5 = vld [vmem:[#allocation7 + $0x50] sm:$0xff]  ;;  %v119_v6 = vld [vmem:[#allocation7 + $0x58] sm:$0xff]  ;;  %v137_v10 = vld [vmem:[#allocation7 + $0xe8] sm:$0xff] }
  0x47   :  { %v79_v7 = vld [vmem:[#allocation5 + $0x50] sm:$0xff]  ;;  %v80_v8 = vld [vmem:[#allocation5 + $0x58] sm:$0xff]  ;;  %v97_v11 = vld [vmem:[#allocation5 + $0xe0] sm:$0xff]  ;;  %v421_v13 = vpack.c.bf16 %v119_v6, %v118_v5  ;;  %v423_v15 = vpack.c.bf16 %v137_v10, %v136_v9 }
  0x48   :  { %v98_v12 = vld [vmem:[#allocation5 + $0xe8] sm:$0xff]  ;;  %v453_v14 = vpack.c.bf16 %v80_v8, %v79_v7  ;;  %v120_v17 = vld [vmem:[#allocation7 + $0x60] sm:$0xff]  ;;  %v138_v21 = vld [vmem:[#allocation7 + $0xf0] sm:$0xff] }
  0x49   :  { %v455_v16 = vpack.c.bf16 %v98_v12, %v97_v11  ;;  %v121_v18 = vld [vmem:[#allocation7 + $0x68] sm:$0xff]  ;;  %v81_v19 = vld [vmem:[#allocation5 + $0x60] sm:$0xff]  ;;  %v139_v22 = vld [vmem:[#allocation7 + $0xf8] sm:$0xff] }
  0x4a   :  { %410 = vmatpush3.bf16.xpose.msra.mxu0 %v409_v38  ;;  %v82_v20 = vld [vmem:[#allocation5 + $0x68] sm:$0xff]  ;;  %v99_v23 = vld [vmem:[#allocation5 + $0xf0] sm:$0xff]  ;;  %v100_v24 = vld [vmem:[#allocation5 + $0xf8] sm:$0xff]  ;;  %v425_v25 = vpack.c.bf16 %v121_v18, %v120_v17  ;;  %v427_v27 = vpack.c.bf16 %v139_v22, %v138_v21 }
  0x4b   :  { %412 = vmatprep.subr.bf16.mxu0 %v411_v40  ;;  %v457_v26 = vpack.c.bf16 %v82_v20, %v81_v19  ;;  %v459_v28 = vpack.c.bf16 %v100_v24, %v99_v23  ;;  %v122_v29 = vld [vmem:[#allocation7 + $0x70] sm:$0xff]  ;;  %v123_v30 = vld [vmem:[#allocation7 + $0x78] sm:$0xff]  ;;  %v218_v40 = vsub.s32 0, %v217_v36 }
  0x4c   :  { %442 = vmatpush3.bf16.xpose.msra.mxu1 %v441_v39  ;;  %v83_v31 = vld [vmem:[#allocation5 + $0x70] sm:$0xff]  ;;  %v84_v32 = vld [vmem:[#allocation5 + $0x78] sm:$0xff]  ;;  %v429_v33 = vpack.c.bf16 %v123_v30, %v122_v29 }
  0x4d   :  { %444 = vmatprep.subr.bf16.mxu1 %v443_v41  ;;  %v461_v34 = vpack.c.bf16 %v84_v32, %v83_v31  ;;  %v68_v37 = vld [vmem:[%s690_s6] sm:$0x3]  ;;  %v222_v41 = vsub.s32 1, %v217_v36 }
  0x4e   :  { %v211_v38 = vld [vmem:[%s688_s4] sm:$0x3]  ;;  %v219_v43 = vrot.slane %v68_v37, %v218_v40  ;;  %s568_s4 = smov [#allocation8]  }
  0x4f   :  { %v212_v39 = vmul.f32 %v211_v38, %v68_v37  ;;  %v213_v42 = vld [vmem:[%s687_s3] sm:$0x3]  ;;  %s320_s6 = sshll.u32 %s568_s4, 4  ;;  %s321_s6 = int_to_ptr.vmem [resolvable:$true] %s320_s6 }
  0x50   :  { %s535_s3 = scalar_lea.vmem %s321_s6, 256  ;;  %p540_p11 = scmp.lt.s32.totalorder %s321_s6, %s321_s6 }
  0x51   :  { %v214_v44 = vadd.f32 %v213_v42, %v212_v39  ;;  %p536_p10 = scmp.ne.s32.totalorder %s321_s6, %s535_s3  ;;  %p541_p12 = scmp.lt.s32.totalorder %s535_s3, %s535_s3 }
  0x52   :  { %414 = vmatpush3.bf16.xpose.msra.mxu0 %v413_v53 }
  0x53   :  { %416 = vmatprep.subr.bf16.mxu0 %v415_v55  ;;  %v307_v53 = vrot.slane %v214_v44, %v222_v41  ;;  %p542_p13 = por %p541_p12, %p540_p11 }
  0x54   :  { %446 = vmatpush3.bf16.xpose.msra.mxu1 %v445_v54 }
  0x55   :  { %448 = vmatprep.subr.bf16.mxu1 %v447_v56  ;;  %p543_p0 = pnand %p542_p13, %p536_p10 }
  0x5a   :  { %418 = vmatpush3.bf16.xpose.msra.mxu0 %v417_v1 }
  0x5b   :  { %420 = vmatprep.subr.bf16.mxu0 %v419_v3 }
  0x5c   :  { %450 = vmatpush3.bf16.xpose.msra.mxu1 %v449_v2 }
  0x5d   :  { %452 = vmatprep.subr.bf16.mxu1 %v451_v4 }
  0x62   :  { %422 = vmatpush3.bf16.xpose.msra.mxu0 %v421_v13 }
  0x63   :  { %424 = vmatprep.subr.bf16.mxu0 %v423_v15 }
  0x64   :  { %454 = vmatpush3.bf16.xpose.msra.mxu1 %v453_v14 }
  0x65   :  { %456 = vmatprep.subr.bf16.mxu1 %v455_v16 }
  0x6a   :  { %426 = vmatpush3.bf16.xpose.msra.mxu0 %v425_v25 }
  0x6b   :  { %428 = vmatprep.subr.bf16.mxu0 %v427_v27 }
  0x6c   :  { %458 = vmatpush3.bf16.xpose.msra.mxu1 %v457_v26 }
  0x6d   :  { %460 = vmatprep.subr.bf16.mxu1 %v459_v28 }
  0x72   :  { %430 = vmatpush3.bf16.xpose.msra.mxu0 %v429_v33 }
  0x74   :  { %462 = vmatpush3.bf16.xpose.msra.mxu1 %v461_v34 }
  0x79   :  { %364 = vmatmul.mubr.f32.vlgmr.msra.gmra.mrb[0].mxu0 %v657_v50  ;;  %v303_v50 = vrot.slane %v214_v44, %v218_v40 }
  0x7b   :  { %398 = vmatmul.mubr.f32.vlgmr.msra.gmra.mrb[0].mxu1 %v651_v45  ;;  %v223_v45 = vrot.slane %v68_v37, %v222_v41 }
 0x14c   :  { %v206_v46 = vpop.f32.mrb[0].mxu0 }
 0x14d   :  { %v226_v47 = vmul.f32 %v219_v43, %v206_v46  ;;  %v208_v48 = vpop.f32.mrb[1].mxu0 }
 0x14e   :  { %v294_v49 = vpop.f32.mrb[0].mxu1  ;;  %v227_v51 = vmul.f32 %v223_v45, %v208_v48 }
 0x14f   :  { %v296_v52 = vpop.f32.mrb[1].mxu1  ;;  %v295_v54 = vadd.f32 %v294_v49, %v226_v47 }
 0x150   :  { %v297_v55 = vadd.f32 %v296_v52, %v227_v51 }
 0x151   :  { %v310_v56 = vadd.f32 %v303_v50, %v295_v54 }
 0x152   :  { %v311_v57 = vadd.f32 %v307_v53, %v297_v55 }
 0x153   :  { %312 = vst [vmem:[#allocation8] sm:$0xff] %v310_v56 }
 0x154   :  { %313 = vst [vmem:[#allocation8 + $0x8] sm:$0xff] %v311_v57 }
 0x155   :  { %546 = shalt.err (!%p543_p0)
}
 0x156   :  { %s547_s22 = scalar_lea.hbm %s691_s7, 256 }
 0x157   :  { %p548_p1 = scmp.ne.s32.totalorder %s691_s7, %s547_s22  ;;  %p551_p2 = scmp.lt.u32.totalorder %s547_s22, %s691_s7 }
 0x159   :  { %p553_p3 = pnand %p551_p2, %p548_p1 }
 0x15b   :  { %556 = shalt.err (!%p553_p3)
}
 0x15c   :  { %323 = dma.vmem_to_hbm [thread:$0]  %s321_s6, 256, %s691_s7, [#allocation4]  }
 0x15d   :  { %561 = dma.done.wait [#allocation4], 256  }
 0x15e   :  { %562 = vsyncadd [#allocation4], 4294967040 }
 0x15f   :  { %327 = vsyncpa [#allocation3], 1 }
 0x160   :  { %328 = vsyncpa [#allocation6], 1 }
 0x161   :  { %329 = vsyncpa [#allocation4], 1 }

</bundles_post_ra>
